<compile_context>
chip_gen: v7x
topology: tpu7x:2x2x1
jax: 0.10.0
libtpu: 0.0.40
codegen_flags: <defaults>
</compile_context>

<pallas_src>
import functools

import jax
import jax.numpy as jnp
from jax.experimental import pallas as pl
from jax.experimental.pallas import tpu as pltpu


def _round_up(n: int, m: int) -> int:
    return (n + m - 1) // m * m


def _vmem_limit_bytes() -> int:
    """Per-generation VMEM budget: leave headroom for Mosaic internal scratch."""
    try:
        cap = pltpu.get_tpu_info().vmem_capacity_bytes
    except Exception:
        cap = 128 * 1024 * 1024
    if cap <= 64 * 1024 * 1024:        # v7x-class: 64 MiB physical per TC
        return 48 * 1024 * 1024
    return 100 * 1024 * 1024           # v5e / v6e: 128 MiB physical


def ffn_kernel(x_ref, ln_w_ref, ln_b_ref, w1_ref, b1_ref, w2_ref, b2_ref,
               o_ref, y_sc, acc_sc, *, eps: float, d_true: int):
    h_id = pl.program_id(1)

    @pl.when(h_id == 0)
    def _layer_norm():
        # LayerNorm over the TRUE feature width (biased variance, torch-style).
        x = x_ref[...].astype(jnp.float32)                     # (tm, D_pad)
        d_pad = x.shape[-1]
        inv_d = 1.0 / d_true
        mean = jnp.sum(x, axis=-1, keepdims=True) * inv_d      # padded lanes are 0
        centered = x - mean
        # Padded lanes hold x == 0, so each contributes exactly mean^2 to
        # sum(centered^2); subtract that closed-form instead of masking.
        extra = float(d_pad - d_true)
        var = (jnp.sum(centered * centered, axis=-1, keepdims=True)
               - extra * (mean * mean)) * inv_d
        y = centered * jax.lax.rsqrt(var + eps)
        # ln params are zero-padded, so padded lanes of y become exactly 0.
        y = y * ln_w_ref[...] + ln_b_ref[...]
        y_sc[...] = y.astype(y_sc.dtype)                       # cache bf16 LN out
        acc_sc[...] = jnp.zeros_like(acc_sc)

    # ---- linear1 chunk -> dropout1 (identity) -> relu   (bf16 MXU, f32 accum)
    # TODO(synk): nn.Dropout in train mode would mask/scale here; eval == identity.
    h = jnp.dot(y_sc[...], w1_ref[...], preferred_element_type=jnp.float32)
    h = jnp.maximum(h + b1_ref[...], 0.0)                      # fused bias + ReLU

    # ---- linear2 chunk, accumulated over H chunks -> dropout2 (identity)
    acc_sc[...] += jnp.dot(h.astype(w2_ref.dtype), w2_ref[...],
                           preferred_element_type=jnp.float32)

    @pl.when(h_id == pl.num_programs(1) - 1)
    def _store():
        o_ref[...] = (acc_sc[...] + b2_ref[...]).astype(o_ref.dtype)


def prepare_ffn_params(ln_w, ln_b, w1, b1, w2, b2, *,
                       feature_align=128, max_h_chunk=512):
    """Pad / cast parameters ONCE (hoisted out of the per-call path).

    w1: (D, H), w2: (H, D) stored as (in, out) so the kernel computes plain y @ W.
    Weights are cast to bf16 (MXU-native, half the DMA bytes / VMEM residency).
    """
    D, H = w1.shape
    assert w2.shape == (H, D) and ln_w.shape == (D,) and ln_b.shape == (D,)
    assert b1.shape == (H,) and b2.shape == (D,)

    # TODO(synk): round to 256 on v6e/v7x (256x256 MXU) when padding anyway.
    D_pad = _round_up(D, feature_align)
    th = min(max_h_chunk, _round_up(H, feature_align))   # H chunk (lane-dense)
    H_pad = _round_up(H, th)                             # padded H divisible by th

    f32, bf16 = jnp.float32, jnp.bfloat16

    def pad2(a, shape, dtype):
        if a.shape == shape and a.dtype == dtype:
            return a
        return jnp.zeros(shape, dtype).at[:a.shape[0], :a.shape[1]].set(
            a.astype(dtype))

    def pad_row(v, p, dtype):
        return jnp.zeros((1, p), dtype).at[0, :v.shape[0]].set(v.astype(dtype))

    # TODO(synk): optional fp8 weights (+ per-channel scales) on v7x for 2x MXU rate.
    return dict(
        ln_w=pad_row(ln_w, D_pad, f32),
        ln_b=pad_row(ln_b, D_pad, f32),
        w1=pad2(w1, (D_pad, H_pad), bf16),
        b1=pad_row(b1, H_pad, f32),
        w2=pad2(w2, (H_pad, D_pad), bf16),
        b2=pad_row(b2, D_pad, f32),
        D=D, H=H, D_pad=D_pad, H_pad=H_pad, th=th,
    )


def feed_forward_block(x2d, params, *, eps=1e-5, tm=256):
    """x2d: (N, D) f32 with N = batch*seq.  params: output of prepare_ffn_params."""
    N, D = x2d.shape
    assert D == params["D"]
    D_pad, H_pad, th = params["D_pad"], params["H_pad"], params["th"]
    n_h = H_pad // th

    # Row tile: as large as requested, clamped to the problem, multiple of 8
    # sublanes.  Keep at least 2 row-grid steps when N allows so both v7x
    # TensorCores get work (the row axis is the "parallel" / megacore axis).
    n_rows8 = _round_up(N, 8)
    tm_eff = min(_round_up(tm, 8), n_rows8)
    if n_rows8 >= 16 and pl.cdiv(n_rows8, tm_eff) < 2:
        tm_eff = _round_up(pl.cdiv(n_rows8, 2), 8)
    N_pad = _round_up(N, tm_eff)

    # Skip the activation pad copy in the aligned (common transformer) case.
    x_in = x2d.astype(jnp.float32)
    if (N_pad, D_pad) != (N, D):
        # NOTE: zero-padded rows produce garbage-but-finite outputs that are
        # sliced off below — intentional, do not read the padded region.
        x_p = jnp.zeros((N_pad, D_pad), jnp.float32).at[:N, :D].set(x_in)
    else:
        x_p = x_in

    # Constant-index operands buy nothing from double-buffering -> Buffered(1).
    # W1/W2/b1 are streamed over the H axis, so keep 2 buffers unless n_h == 1.
    resident = dict(pipeline_mode=pl.Buffered(1))
    stream = dict(pipeline_mode=pl.Buffered(1) if n_h == 1 else pl.Buffered(2))

    kern = functools.partial(ffn_kernel, eps=eps, d_true=D)

    out_p = pl.pallas_call(
        kern,
        out_shape=jax.ShapeDtypeStruct((N_pad, D_pad), x2d.dtype),
        grid_spec=pltpu.PrefetchScalarGridSpec(
            num_scalar_prefetch=0,
            grid=(N_pad // tm_eff, n_h),
            in_specs=[
                pl.BlockSpec((tm_eff, D_pad), lambda i, h: (i, 0)),             # x rows
                pl.BlockSpec((1, D_pad), lambda i, h: (0, 0), **resident),      # ln weight
                pl.BlockSpec((1, D_pad), lambda i, h: (0, 0), **resident),      # ln bias
                pl.BlockSpec((D_pad, th), lambda i, h: (0, h), **stream),       # W1 chunk
                pl.BlockSpec((1, th), lambda i, h: (0, h), **stream),           # b1 chunk
                pl.BlockSpec((th, D_pad), lambda i, h: (h, 0), **stream),       # W2 chunk
                pl.BlockSpec((1, D_pad), lambda i, h: (0, 0), **resident),      # b2
            ],
            out_specs=pl.BlockSpec((tm_eff, D_pad), lambda i, h: (i, 0)),
            scratch_shapes=[
                pltpu.VMEM((tm_eff, D_pad), jnp.bfloat16),   # cached LN output y
                pltpu.VMEM((tm_eff, D_pad), jnp.float32),    # f32 output accumulator
            ],
        ),
        compiler_params=pltpu.CompilerParams(
            dimension_semantics=("parallel", "arbitrary"),
            vmem_limit_bytes=_vmem_limit_bytes()),
    )(x_p, params["ln_w"], params["ln_b"], params["w1"], params["b1"],
      params["w2"], params["b2"])

    if (N_pad, D_pad) != (N, D):
        return out_p[:N, :D]
    return out_p


if __name__ == "__main__":
    # Small shapes implied by the module: (batch, seq, input_dim), feature-last.
    batch, seq, input_dim, hidden_dim = 2, 8, 32, 64

    key = jax.random.PRNGKey(0)
    kx, k1, k2, k3, k4 = jax.random.split(key, 5)

    x = jax.random.normal(kx, (batch, seq, input_dim), dtype=jnp.float32)

    # LayerNorm torch defaults: weight=1, bias=0.  Linear weights stored (in, out).
    ln_w = jnp.ones((input_dim,), dtype=jnp.float32)
    ln_b = jnp.zeros((input_dim,), dtype=jnp.float32)
    w1 = jax.random.normal(k1, (input_dim, hidden_dim), dtype=jnp.float32) * 0.1
    b1 = jax.random.normal(k2, (hidden_dim,), dtype=jnp.float32) * 0.1
    w2 = jax.random.normal(k3, (hidden_dim, input_dim), dtype=jnp.float32) * 0.1
    b2 = jax.random.normal(k4, (input_dim,), dtype=jnp.float32) * 0.1

    # Pad / cast the parameters ONCE (not on every forward call).
    params = prepare_ffn_params(ln_w, ln_b, w1, b1, w2, b2)

    # Flatten (B, S, D) -> (B*S, D) for the row-parallel kernel.
    x2d = x.reshape(batch * seq, input_dim)
    out2d = feed_forward_block(x2d, params)
    out = out2d.reshape(batch, seq, input_dim)
    jax.block_until_ready(out)

    # Pure-JAX f32 reference (eval-mode dropout == identity).  Tolerance loosened
    # because the kernel uses bf16 matmul operands with f32 accumulation.
    mean = jnp.mean(x, axis=-1, keepdims=True)
    var = jnp.mean((x - mean) ** 2, axis=-1, keepdims=True)
    y = (x - mean) * jax.lax.rsqrt(var + 1e-5) * ln_w + ln_b
    ref = jnp.maximum(y @ w1 + b1, 0.0) @ w2 + b2
    assert jnp.allclose(out, ref, atol=5e-2, rtol=5e-2), "mismatch vs reference"

    print("KERNEL_OK")
</pallas_src>

<mosaic_0001>
module attributes {stable_mosaic.version = 11 : i64} {
  func.func @ffn_kernel(%arg0: i32, %arg1: i32, %arg2: memref<8x128xf32, #tpu.memory_space<vmem>>, %arg3: memref<1x128xf32, #tpu.memory_space<vmem>>, %arg4: memref<1x128xf32, #tpu.memory_space<vmem>>, %arg5: memref<128x128xbf16, #tpu.memory_space<vmem>>, %arg6: memref<1x128xf32, #tpu.memory_space<vmem>>, %arg7: memref<128x128xbf16, #tpu.memory_space<vmem>>, %arg8: memref<1x128xf32, #tpu.memory_space<vmem>>, %arg9: memref<8x128xf32, #tpu.memory_space<vmem>>, %arg10: memref<8x128xbf16, #tpu.memory_space<vmem>>, %arg11: memref<8x128xf32, #tpu.memory_space<vmem>>) attributes {dimension_semantics = [#tpu.dimension_semantics<parallel>, #tpu.dimension_semantics<arbitrary>], iteration_bounds = array<i64: 2, 1>, scalar_prefetch = 0 : i64, scratch_operands = 2 : i64, tpu.core_type = #tpu.core_type<tc>, window_params = [{transform_indices = @transform_0, window_bounds = array<i64: 8, 128>}, {pipeline_mode = #tpu.pipeline_mode<synchronous>, transform_indices = @transform_1, window_bounds = array<i64: 1, 128>}, {pipeline_mode = #tpu.pipeline_mode<synchronous>, transform_indices = @transform_2, window_bounds = array<i64: 1, 128>}, {pipeline_mode = #tpu.pipeline_mode<synchronous>, transform_indices = @transform_3, window_bounds = array<i64: 128, 128>}, {pipeline_mode = #tpu.pipeline_mode<synchronous>, transform_indices = @transform_4, window_bounds = array<i64: 1, 128>}, {pipeline_mode = #tpu.pipeline_mode<synchronous>, transform_indices = @transform_5, window_bounds = array<i64: 128, 128>}, {pipeline_mode = #tpu.pipeline_mode<synchronous>, transform_indices = @transform_6, window_bounds = array<i64: 1, 128>}, {transform_indices = @transform_7, window_bounds = array<i64: 8, 128>}]} {
    %c0_i32 = arith.constant 0 : i32
    %0 = arith.cmpi eq, %arg1, %c0_i32 : i32
    %1 = arith.extui %0 : i1 to i32
    %c0_i32_0 = arith.constant 0 : i32
    %2 = arith.cmpi ne, %1, %c0_i32_0 : i32
    scf.if %2 {
      %c0_16 = arith.constant 0 : index
      %c0_17 = arith.constant 0 : index
      %20 = vector.load %arg2[%c0_16, %c0_17] : memref<8x128xf32, #tpu.memory_space<vmem>>, vector<8x128xf32>
      %cst_18 = arith.constant dense<0.000000e+00> : vector<8xf32>
      %21 = vector.multi_reduction <add>, %20, %cst_18 [1] : vector<8x128xf32> to vector<8xf32>
      %22 = vector.shape_cast %21 : vector<8xf32> to vector<8x1xf32>
      %cst_19 = arith.constant 3.125000e-02 : f32
      %23 = vector.broadcast %cst_19 : f32 to vector<8x1xf32>
      %24 = arith.mulf %22, %23 : vector<8x1xf32>
      %25 = vector.broadcast %24 : vector<8x1xf32> to vector<8x128xf32>
      %26 = arith.subf %20, %25 : vector<8x128xf32>
      %27 = arith.mulf %26, %26 : vector<8x128xf32>
      %cst_20 = arith.constant dense<0.000000e+00> : vector<8xf32>
      %28 = vector.multi_reduction <add>, %27, %cst_20 [1] : vector<8x128xf32> to vector<8xf32>
      %29 = vector.shape_cast %28 : vector<8xf32> to vector<8x1xf32>
      %30 = arith.mulf %24, %24 : vector<8x1xf32>
      %cst_21 = arith.constant 9.600000e+01 : f32
      %31 = vector.broadcast %cst_21 : f32 to vector<8x1xf32>
      %32 = arith.mulf %31, %30 : vector<8x1xf32>
      %33 = arith.subf %29, %32 : vector<8x1xf32>
      %cst_22 = arith.constant 3.125000e-02 : f32
      %34 = vector.broadcast %cst_22 : f32 to vector<8x1xf32>
      %35 = arith.mulf %33, %34 : vector<8x1xf32>
      %cst_23 = arith.constant 9.99999974E-6 : f32
      %36 = vector.broadcast %cst_23 : f32 to vector<8x1xf32>
      %37 = arith.addf %35, %36 : vector<8x1xf32>
      %38 = math.rsqrt %37 : vector<8x1xf32>
      %39 = vector.broadcast %38 : vector<8x1xf32> to vector<8x128xf32>
      %40 = arith.mulf %26, %39 : vector<8x128xf32>
      %c0_24 = arith.constant 0 : index
      %c0_25 = arith.constant 0 : index
      %41 = vector.load %arg3[%c0_24, %c0_25] : memref<1x128xf32, #tpu.memory_space<vmem>>, vector<1x128xf32>
      %42 = vector.broadcast %41 : vector<1x128xf32> to vector<8x128xf32>
      %43 = arith.mulf %40, %42 : vector<8x128xf32>
      %c0_26 = arith.constant 0 : index
      %c0_27 = arith.constant 0 : index
      %44 = vector.load %arg4[%c0_26, %c0_27] : memref<1x128xf32, #tpu.memory_space<vmem>>, vector<1x128xf32>
      %45 = vector.broadcast %44 : vector<1x128xf32> to vector<8x128xf32>
      %46 = arith.addf %43, %45 : vector<8x128xf32>
      %47 = arith.truncf %46 : vector<8x128xf32> to vector<8x128xbf16>
      %c0_28 = arith.constant 0 : index
      %c0_29 = arith.constant 0 : index
      %48 = vector.load %arg10[%c0_28, %c0_29] : memref<8x128xbf16, #tpu.memory_space<vmem>>, vector<8x128xbf16>
      tpu.vector_store %arg10[%c0_28, %c0_29], %47 {strides = array<i32>} : memref<8x128xbf16, #tpu.memory_space<vmem>>, vector<8x128xbf16>,
      %cst_30 = arith.constant 0.000000e+00 : f32
      %49 = vector.broadcast %cst_30 : f32 to vector<8x128xf32>
      %c0_31 = arith.constant 0 : index
      %c0_32 = arith.constant 0 : index
      %50 = vector.load %arg11[%c0_31, %c0_32] : memref<8x128xf32, #tpu.memory_space<vmem>>, vector<8x128xf32>
      tpu.vector_store %arg11[%c0_31, %c0_32], %49 {strides = array<i32>} : memref<8x128xf32, #tpu.memory_space<vmem>>, vector<8x128xf32>,
    } else {
    }
    %c0 = arith.constant 0 : index
    %c0_1 = arith.constant 0 : index
    %3 = vector.load %arg10[%c0, %c0_1] : memref<8x128xbf16, #tpu.memory_space<vmem>>, vector<8x128xbf16>
    %c0_2 = arith.constant 0 : index
    %c0_3 = arith.constant 0 : index
    %4 = vector.load %arg5[%c0_2, %c0_3] : memref<128x128xbf16, #tpu.memory_space<vmem>>, vector<128x128xbf16>
    %cst = arith.constant dense<0.000000e+00> : vector<8x128xf32>
    %5 = tpu.matmul %3, %4, %cst {dimension_numbers = #tpu.dot_dimension_numbers<[1], [0], [0], [1], [0, 0, 1, 1], [], []>} : vector<8x128xbf16>, vector<128x128xbf16>, vector<8x128xf32> -> vector<8x128xf32>
    %c0_4 = arith.constant 0 : index
    %c0_5 = arith.constant 0 : index
    %6 = vector.load %arg6[%c0_4, %c0_5] : memref<1x128xf32, #tpu.memory_space<vmem>>, vector<1x128xf32>
    %7 = vector.broadcast %6 : vector<1x128xf32> to vector<8x128xf32>
    %8 = arith.addf %5, %7 : vector<8x128xf32>
    %cst_6 = arith.constant 0.000000e+00 : f32
    %9 = vector.broadcast %cst_6 : f32 to vector<8x128xf32>
    %10 = arith.maximumf %8, %9 : vector<8x128xf32>
    %c0_7 = arith.constant 0 : index
    %c0_8 = arith.constant 0 : index
    %11 = vector.load %arg11[%c0_7, %c0_8] : memref<8x128xf32, #tpu.memory_space<vmem>>, vector<8x128xf32>
    %12 = arith.truncf %10 : vector<8x128xf32> to vector<8x128xbf16>
    %c0_9 = arith.constant 0 : index
    %c0_10 = arith.constant 0 : index
    %13 = vector.load %arg7[%c0_9, %c0_10] : memref<128x128xbf16, #tpu.memory_space<vmem>>, vector<128x128xbf16>
    %cst_11 = arith.constant dense<0.000000e+00> : vector<8x128xf32>
    %14 = tpu.matmul %12, %13, %cst_11 {dimension_numbers = #tpu.dot_dimension_numbers<[1], [0], [0], [1], [0, 0, 1, 1], [], []>} : vector<8x128xbf16>, vector<128x128xbf16>, vector<8x128xf32> -> vector<8x128xf32>
    %15 = arith.addf %11, %14 : vector<8x128xf32>
    %c0_12 = arith.constant 0 : index
    %c0_13 = arith.constant 0 : index
    %16 = vector.load %arg11[%c0_12, %c0_13] : memref<8x128xf32, #tpu.memory_space<vmem>>, vector<8x128xf32>
    tpu.vector_store %arg11[%c0_12, %c0_13], %15 {strides = array<i32>} : memref<8x128xf32, #tpu.memory_space<vmem>>, vector<8x128xf32>,
    %c0_i32_14 = arith.constant 0 : i32
    %17 = arith.cmpi eq, %arg1, %c0_i32_14 : i32
    %18 = arith.extui %17 : i1 to i32
    %c0_i32_15 = arith.constant 0 : i32
    %19 = arith.cmpi ne, %18, %c0_i32_15 : i32
    scf.if %19 {
      %c0_16 = arith.constant 0 : index
      %c0_17 = arith.constant 0 : index
      %20 = vector.load %arg11[%c0_16, %c0_17] : memref<8x128xf32, #tpu.memory_space<vmem>>, vector<8x128xf32>
      %c0_18 = arith.constant 0 : index
      %c0_19 = arith.constant 0 : index
      %21 = vector.load %arg8[%c0_18, %c0_19] : memref<1x128xf32, #tpu.memory_space<vmem>>, vector<1x128xf32>
      %22 = vector.broadcast %21 : vector<1x128xf32> to vector<8x128xf32>
      %23 = arith.addf %20, %22 : vector<8x128xf32>
      %c0_20 = arith.constant 0 : index
      %c0_21 = arith.constant 0 : index
      %24 = vector.load %arg9[%c0_20, %c0_21] : memref<8x128xf32, #tpu.memory_space<vmem>>, vector<8x128xf32>
      tpu.vector_store %arg9[%c0_20, %c0_21], %23 {strides = array<i32>} : memref<8x128xf32, #tpu.memory_space<vmem>>, vector<8x128xf32>,
    } else {
    }
    return
  }
  func.func @transform_0(%arg0: i32, %arg1: i32) -> (i32, i32) {
    %c0_i32 = arith.constant 0 : i32
    %c0_i32_0 = arith.constant 0 : i32
    return %arg0, %c0_i32 : i32, i32
  }
  func.func @transform_1(%arg0: i32, %arg1: i32) -> (i32, i32) {
    %c0_i32 = arith.constant 0 : i32
    %c0_i32_0 = arith.constant 0 : i32
    %c0_i32_1 = arith.constant 0 : i32
    return %c0_i32, %c0_i32_0 : i32, i32
  }
  func.func @transform_2(%arg0: i32, %arg1: i32) -> (i32, i32) {
    %c0_i32 = arith.constant 0 : i32
    %c0_i32_0 = arith.constant 0 : i32
    %c0_i32_1 = arith.constant 0 : i32
    return %c0_i32, %c0_i32_0 : i32, i32
  }
  func.func @transform_3(%arg0: i32, %arg1: i32) -> (i32, i32) {
    %c0_i32 = arith.constant 0 : i32
    %c0_i32_0 = arith.constant 0 : i32
    return %c0_i32, %arg1 : i32, i32
  }
  func.func @transform_4(%arg0: i32, %arg1: i32) -> (i32, i32) {
    %c0_i32 = arith.constant 0 : i32
    %c0_i32_0 = arith.constant 0 : i32
    return %c0_i32, %arg1 : i32, i32
  }
  func.func @transform_5(%arg0: i32, %arg1: i32) -> (i32, i32) {
    %c0_i32 = arith.constant 0 : i32
    %c0_i32_0 = arith.constant 0 : i32
    return %arg1, %c0_i32 : i32, i32
  }
  func.func @transform_6(%arg0: i32, %arg1: i32) -> (i32, i32) {
    %c0_i32 = arith.constant 0 : i32
    %c0_i32_0 = arith.constant 0 : i32
    %c0_i32_1 = arith.constant 0 : i32
    return %c0_i32, %c0_i32_0 : i32, i32
  }
  func.func @transform_7(%arg0: i32, %arg1: i32) -> (i32, i32) {
    %c0_i32 = arith.constant 0 : i32
    %c0_i32_0 = arith.constant 0 : i32
    return %arg0, %c0_i32 : i32, i32
  }
}

</mosaic_0001>

<bundles_post_ra>
// kernel: tpu_custom_call.1
= control target key start
LH: loop header
LB: loop body
LE: loop exit
PB: predicated region body
PF: predicated region fallthrough
CT: control target
= control target key end

     0   :  { %s1780_s0 = inlined_call_operand.hbm [shape: f32[16,128], index: 0, kind: input, shape index: {}]   ;;  %s1781_s1 = inlined_call_operand.hbm [shape: f32[1,128], index: 1, kind: input, shape index: {}]   ;;  %s1782_s2 = inlined_call_operand.hbm [shape: f32[1,128], index: 2, kind: input, shape index: {}]   ;;  %s1783_s3 = inlined_call_operand.hbm [shape: bf16[128,128], index: 3, kind: input, shape index: {}]   ;;  %s1784_s4 = inlined_call_operand.hbm [shape: f32[1,128], index: 4, kind: input, shape index: {}]   ;;  %s1785_s5 = inlined_call_operand.hbm [shape: bf16[128,128], index: 5, kind: input, shape index: {}]   ;;  %s1786_s6 = inlined_call_operand.hbm [shape: f32[1,128], index: 6, kind: input, shape index: {}]   ;;  %s1787_s7 = inlined_call_operand.hbm [shape: f32[16,128], index: 7, kind: output, shape index: {}]  }
   0x1   :  { %1793 = sst [smem:[#allocation22_spill]] %s1781_s1 }
   0x2   :  { %1794 = sst [smem:[#allocation23_spill]] %s1783_s3 }
   0x3   :  { %12 = vsyncpa [#allocation5], 0 }
   0x4   :  { %14 = vsyncpa [#allocation5 + $0x1], 0 }
   0x5   :  { %15 = vsyncpa [#allocation8], 0 }
   0x6   :  { %16 = vsyncpa [#allocation11], 0 }
   0x7   :  { %17 = vsyncpa [#allocation14], 0 }
   0x8   :  { %18 = vsyncpa [#allocation6], 0 }
   0x9   :  { %20 = vsyncpa [#allocation6 + $0x1], 0  ;;  %s1430_s24 = smov 0   ;;  %s1432_s25 = smov 0  }
   0xa   :  { %s1434_s26 = smov 0   ;;  %s1436_s27 = smov 0  }
   0xb   :  { %s1438_s28 = smov 0   ;;  %s1440_s29 = smov 0  }
   0xc LB: > { %s1791_s30 = sadd.s32 4294967295, %s1376_s29   ;;  %p838_p0 = scmp.ge.s32.totalorder %s1376_s29, 1  ;;  %s1376_s29 = sphi %s1440_s29, %s26_s29   ;;  %s1372_s28 = sphi %s1438_s28, %s1817_s28   ;;  %s1368_s27 = sphi %s1436_s27, %s1816_s27   ;;  %s1364_s26 = sphi %s1434_s26, %s1815_s26   ;;  %s1360_s25 = sphi %s1432_s25, %s1814_s25   ;;  %s1356_s24 = sphi %s1430_s24, %s1813_s24  }
   0xd   : > { %p1464_p1 = scmp.eq.s32.totalorder %s1791_s30, 0  ;;  %p236_p2 = scmp.lt.s32.totalorder %s1376_s29, 3 }
   0xe   : > { %s1378_s10 = smov [#allocation7]   ;;  %s1379_s12 = smov [#allocation10]  }
   0xf   : > { %s1795_s8 = scalar_select %p1464_p1, 1, 0 }
  0x10   : > { %p1469_p3 = pnand %p838_p0, %p236_p2  ;;  %s249_s11 = sshll.u32 %s1378_s10, 4  ;;  %s250_s11 = int_to_ptr.vmem [resolvable:$true] %s249_s11 }
  0x11   : > { %s272_s13 = sshll.u32 %s1379_s12, 4  ;;  %s1380_s15 = smov [#allocation13]   ;;  %s1482_s13 = int_to_ptr.vmem [resolvable:$true] %s272_s13 }
  0x12   : > { %s1796_s9 = scalar_select %p1469_p3, 1, 0 }
  0x13   : > { %p967_p5 = pneg %p1469_p3  ;;  %s1484_s16 = sshll.u32 %s1380_s15, 4  ;;  %s302_s16 = int_to_ptr.vmem [resolvable:$true] %s1484_s16 }
  0x14   : > { %s1798_s1 = sld [smem:[#allocation22_spill]] }
  0x15   : > { %p1478_p6 = pnand %p967_p5, %p1464_p1 }
  0x17   : > { %p1494_p8 = pneg %p1478_p6 }
  0x1a   : > { %s1084_s19 = scalar_lea.hbm %s1798_s1, 16 }
  0x1b   : > { %p1085_p7 = scmp.ne.s32.totalorder %s1798_s1, %s1084_s19  ;;  %p1091_p11 = scmp.lt.u32.totalorder %s1084_s19, %s1798_s1 }
  0x1d   : > { %p1087_p9 = pnand %p1494_p8, %p1085_p7 }
  0x1f   : > { %p1088_p10 = pneg %p1087_p9 }
  0x21   : > { %p1093_p12 = pnand %p1091_p11, %p1088_p10 }
  0x23   : > { %1096 = shalt.err (!%p1093_p12)
}
  0x24   : > { %s1097_s12 = scalar_lea.vmem %s250_s11, 16  ;;  %s1104_s15 = scalar_lea.vmem %s250_s11, 32 }
  0x25   : > { %p1098_p13 = scmp.ne.s32.totalorder %s250_s11, %s1097_s12  ;;  %p1105_p5 = scmp.lt.s32.totalorder %s250_s11, %s250_s11 }
  0x26   : > { %p1106_p4 = scmp.lt.s32.totalorder %s1104_s15, %s1097_s12 }
  0x27   : > { %p1100_p0 = pnand %p1098_p13, %p1494_p8 }
  0x28   : > { %p1107_p3 = por %p1106_p4, %p1105_p5 }
  0x29   : > { %p1101_p2 = pneg %p1100_p0 }
  0x2b   : > { %p1108_p1 = pnand %p1107_p3, %p1101_p2 }
  0x2d   : > { %1111 = shalt.err (!%p1108_p1)
}
  0x2e   : > { %970 = dma.hbm_to_vmem [thread:$0]  (!%p1478_p6), %s1798_s1, 16, %s250_s11, [#allocation8]  }
  0x2f   : > { %s1800_s3 = sld [smem:[#allocation23_spill]] }
  0x35   : > { %s1112_s21 = scalar_lea.hbm %s1800_s3, 1024 }
  0x36   : > { %p1113_p7 = scmp.ne.s32.totalorder %s1800_s3, %s1112_s21  ;;  %p1119_p1 = scmp.lt.u32.totalorder %s1112_s21, %s1800_s3 }
  0x38   : > { %p1115_p9 = pnand %p1113_p7, %p1494_p8 }
  0x3a   : > { %p1116_p4 = pneg %p1115_p9 }
  0x3c   : > { %p1121_p3 = pnand %p1119_p1, %p1116_p4 }
  0x3e   : > { %1124 = shalt.err (!%p1121_p3)
}
  0x3f   : > { %s1125_s11 = scalar_lea.vmem %s1482_s13, 1024  ;;  %p1133_p13 = scmp.lt.s32.totalorder %s1482_s13, %s1482_s13 }
  0x40   : > { %p1126_p10 = scmp.ne.s32.totalorder %s1482_s13, %s1125_s11  ;;  %p1134_p0 = scmp.lt.s32.totalorder %s1125_s11, %s1125_s11 }
  0x42   : > { %p1128_p11 = pnand %p1126_p10, %p1494_p8  ;;  %p1135_p2 = por %p1134_p0, %p1133_p13 }
  0x44   : > { %p1129_p12 = pneg %p1128_p11 }
  0x46   : > { %p1136_p5 = pnand %p1135_p2, %p1129_p12 }
  0x48   : > { %1139 = shalt.err (!%p1136_p5)
}
  0x49   : > { %s1381_s17 = smov 64   ;;  %s1382_s18 = smov 4  }
  0x4a   : > { %976 = dma.hbm_to_vmem [thread:$0]  (!%p1478_p6), %s1800_s3, 1024, %s1482_s13, [#allocation11], %s1381_s17, %s1381_s17, %s1382_s18  }
  0x4b   : > { %s1140_s10 = scalar_lea.hbm %s1785_s5, 1024 }
  0x4c   : > { %p1141_p7 = scmp.ne.s32.totalorder %s1785_s5, %s1140_s10  ;;  %p1147_p1 = scmp.lt.u32.totalorder %s1140_s10, %s1785_s5 }
  0x4e   : > { %p1143_p9 = pnand %p1141_p7, %p1494_p8 }
  0x50   : > { %p1144_p4 = pneg %p1143_p9 }
  0x52   : > { %p1149_p3 = pnand %p1147_p1, %p1144_p4 }
  0x54   : > { %1152 = shalt.err (!%p1149_p3)
}
  0x55   : > { %s1153_s19 = scalar_lea.vmem %s302_s16, 1024  ;;  %p1161_p13 = scmp.lt.s32.totalorder %s302_s16, %s302_s16 }
  0x56   : > { %p1154_p10 = scmp.ne.s32.totalorder %s302_s16, %s1153_s19  ;;  %p1162_p0 = scmp.lt.s32.totalorder %s1153_s19, %s1153_s19 }
  0x58   : > { %p1156_p11 = pnand %p1154_p10, %p1494_p8  ;;  %p1163_p2 = por %p1162_p0, %p1161_p13 }
  0x5a   : > { %p1157_p12 = pneg %p1156_p11 }
  0x5c   : > { %p1164_p5 = pnand %p1163_p2, %p1157_p12 }
  0x5e   : > { %1167 = shalt.err (!%p1164_p5)
}
  0x5f   : > { %982 = dma.hbm_to_vmem [thread:$0]  (!%p1478_p6), %s1785_s5, 1024, %s302_s16, [#allocation14], %s1381_s17, %s1381_s17, %s1382_s18  }
  0x60   : > { %s1383_s30 = smov [#allocation9]   ;;  %s1384_s23 = smov [#allocation12]  }
  0x61   : > { %s260_s21 = sshll.u32 %s1383_s30, 4  ;;  %s288_s10 = sshll.u32 %s1384_s23, 4  ;;  %s261_s21 = int_to_ptr.vmem [resolvable:$true] %s260_s21  ;;  %s289_s10 = int_to_ptr.vmem [resolvable:$true] %s288_s10 }
  0x62   : > { %s1168_s11 = scalar_lea.hbm %s1782_s2, 16 }
  0x63   : > { %p1169_p7 = scmp.ne.s32.totalorder %s1782_s2, %s1168_s11  ;;  %p1175_p1 = scmp.lt.u32.totalorder %s1168_s11, %s1782_s2 }
  0x65   : > { %p1171_p9 = pnand %p1169_p7, %p1494_p8 }
  0x67   : > { %p1172_p4 = pneg %p1171_p9 }
  0x69   : > { %p1177_p3 = pnand %p1175_p1, %p1172_p4 }
  0x6b   : > { %1180 = shalt.err (!%p1177_p3)
}
  0x6c   : > { %s1181_s16 = scalar_lea.vmem %s261_s21, 16  ;;  %s1188_s17 = scalar_lea.vmem %s261_s21, 32 }
  0x6d   : > { %p1182_p10 = scmp.ne.s32.totalorder %s261_s21, %s1181_s16  ;;  %p1189_p13 = scmp.lt.s32.totalorder %s261_s21, %s261_s21 }
  0x6e   : > { %p1190_p0 = scmp.lt.s32.totalorder %s1188_s17, %s1181_s16 }
  0x6f   : > { %p1184_p11 = pnand %p1182_p10, %p1494_p8 }
  0x70   : > { %p1191_p2 = por %p1190_p0, %p1189_p13 }
  0x71   : > { %p1185_p12 = pneg %p1184_p11 }
  0x73   : > { %p1192_p5 = pnand %p1191_p2, %p1185_p12 }
  0x75   : > { %1195 = shalt.err (!%p1192_p5)
}
  0x76   : > { %973 = dma.hbm_to_vmem [thread:$0]  (!%p1478_p6), %s1782_s2, 16, %s261_s21, [#allocation8]  }
  0x77   : > { %s1196_s30 = scalar_lea.hbm %s1784_s4, 16 }
  0x78   : > { %p1197_p7 = scmp.ne.s32.totalorder %s1784_s4, %s1196_s30  ;;  %p1203_p1 = scmp.lt.u32.totalorder %s1196_s30, %s1784_s4 }
  0x7a   : > { %p1199_p9 = pnand %p1197_p7, %p1494_p8 }
  0x7c   : > { %p1200_p4 = pneg %p1199_p9 }
  0x7e   : > { %p1205_p3 = pnand %p1203_p1, %p1200_p4 }
  0x80   : > { %1208 = shalt.err (!%p1205_p3)
}
  0x81   : > { %s1209_s19 = scalar_lea.vmem %s289_s10, 16  ;;  %s1216_s21 = scalar_lea.vmem %s289_s10, 32 }
  0x82   : > { %p1210_p10 = scmp.ne.s32.totalorder %s289_s10, %s1209_s19  ;;  %p1217_p13 = scmp.lt.s32.totalorder %s289_s10, %s289_s10 }
  0x83   : > { %p1218_p0 = scmp.lt.s32.totalorder %s1216_s21, %s1209_s19 }
  0x84   : > { %p1212_p11 = pnand %p1210_p10, %p1494_p8 }
  0x85   : > { %p1219_p2 = por %p1218_p0, %p1217_p13 }
  0x86   : > { %p1213_p12 = pneg %p1212_p11 }
  0x88   : > { %p1220_p5 = pnand %p1219_p2, %p1213_p12 }
  0x8a   : > { %1223 = shalt.err (!%p1220_p5)
}
  0x8b   : > { %979 = dma.hbm_to_vmem [thread:$0]  (!%p1478_p6), %s1784_s4, 16, %s289_s10, [#allocation11]  }
  0x8c   : > { %s1385_s17 = smov [#allocation15]   ;;  %s1224_s20 = scalar_lea.hbm %s1786_s6, 16 }
  0x8d   : > { %s315_s1 = sshll.u32 %s1385_s17, 4  ;;  %p1225_p7 = scmp.ne.s32.totalorder %s1786_s6, %s1224_s20  ;;  %s316_s1 = int_to_ptr.vmem [resolvable:$true] %s315_s1 }
  0x8e   : > { %p1231_p1 = scmp.lt.u32.totalorder %s1224_s20, %s1786_s6 }
  0x8f   : > { %p1227_p9 = pnand %p1225_p7, %p1494_p8 }
  0x91   : > { %p1228_p4 = pneg %p1227_p9 }
  0x93   : > { %p1233_p3 = pnand %p1231_p1, %p1228_p4 }
  0x95   : > { %1236 = shalt.err (!%p1233_p3)
}
  0x96   : > { %s1237_s10 = scalar_lea.vmem %s316_s1, 16  ;;  %s1244_s11 = scalar_lea.vmem %s316_s1, 32 }
  0x97   : > { %p1238_p10 = scmp.ne.s32.totalorder %s316_s1, %s1237_s10  ;;  %p1245_p13 = scmp.lt.s32.totalorder %s316_s1, %s316_s1 }
  0x98   : > { %p1246_p0 = scmp.lt.s32.totalorder %s1244_s11, %s1237_s10 }
  0x99   : > { %p1240_p11 = pnand %p1238_p10, %p1494_p8 }
  0x9a   : > { %p1247_p2 = por %p1246_p0, %p1245_p13 }
  0x9b   : > { %p1241_p12 = pneg %p1240_p11 }
  0x9d   : > { %p1248_p5 = pnand %p1247_p2, %p1241_p12 }
  0x9f   : > { %1251 = shalt.err (!%p1248_p5)
}
  0xa0   : > { %985 = dma.hbm_to_vmem [thread:$0]  (!%p1478_p6), %s1786_s6, 16, %s316_s1, [#allocation14]  }
  0xa1   : > { %s837_s22 = sadd.s32 4294967294, %s1376_s29   ;;  %s38_s13 = sadd.s32 1, %s1372_s28 }
  0xa2   : > { %p40_p8 = scmp.ge.s32.totalorder %s38_s13, 2  ;;  %s45_s14 = sadd.s32 1, %s1364_s26 }
  0xa3   : > { %p52_p7 = scmp.ne.s32.totalorder %s1364_s26, %s1360_s25  ;;  %p53_p9 = scmp.eq.s32.totalorder %s1376_s29, 0 }
  0xa4   : > { %s1819_s13 = smov (%p40_p8, %s38_s13), 0  ;;  %p58_p1 = scmp.ne.s32.totalorder %s1360_s25, %s1356_s24 }
  0xa5   : > { %p1614_p4 = por %p53_p9, %p52_p7  ;;  %s42_s17 = ssub.s32 %s1372_s28, %s1819_s13 }
  0xa6   : > { %s1802_s1 = sadd.s32 4294967295, %s1376_s29   ;;  %p43_p3 = scmp.eq.s32.totalorder %s42_s17, 0 }
  0xa7   : > { %p223_p6 = scmp.eq.s32.totalorder %s1802_s1, 1  ;;  %p1803_p10 = scmp.ne.s32.totalorder %s1795_s8, 0 }
  0xa8   : > { %p229_p13 = scmp.eq.s32.totalorder %s837_s22, 1  ;;  %p1000_p2 = scmp.lt.s32.totalorder %s1376_s29, 2 }
  0xa9   : > { %p1626_p11 = por %p1803_p10, %p58_p1  ;;  %p1630_p12 = por %p223_p6, %p52_p7 }
  0xaa   : > { %s1635_s20 = scalar_select %p43_p3, %s1364_s26, %s45_s14  }
  0xab   : > { %s1805_s3 = scalar_select %p1630_p12, 1, 0 }
  0xac   : > { %p1637_p0 = por %p229_p13, %p58_p1  ;;  %s326_s23 = sand.u32 1, %s1364_s26  }
  0xad   : > { %s847_s12 = sshll.u32 %s1372_s28, 7  ;;  %s846_s15 = sshll.u32 %s326_s23, 3 }
  0xae   : > { %s1806_s30 = scalar_select %p1637_p0, 1, 0 }
  0xaf   : > { %s1647_s19 = scalar_lea.hbm %s1780_s0, %s847_s12  ;;  %s330_s21 = scalar_lea.vmem [#allocation4], %s846_s15 }
  0xb0   : > { %s337_s22 = sshll.u32 %s330_s21, 4  ;;  %p1651_p5 = pnand %p1000_p2, %p1614_p4  ;;  %s1655_s22 = int_to_ptr.vmem [resolvable:$true] %s337_s22 }
  0xb1   : > { %s327_s17 = scalar_lea.sflag [#allocation5], %s326_s23  ;;  %s1252_s1 = scalar_lea.hbm %s1647_s19, 128 }
  0xb2   : > { %p1253_p8 = scmp.ne.s32.totalorder %s1647_s19, %s1252_s1  ;;  %p1254_p7 = pneg %p1651_p5 }
  0xb3   : > { %s1257_s16 = scalar_lea.hbm %s1780_s0, 256  ;;  %p1258_p4 = scmp.lt.u32.totalorder %s1647_s19, %s1780_s0 }
  0xb4   : > { %p1255_p9 = pnand %p1254_p7, %p1253_p8  ;;  %p1259_p6 = scmp.lt.u32.totalorder %s1257_s16, %s1252_s1 }
  0xb5   : > { %p1261_p10 = scmp.lt.u32.totalorder %s1252_s1, %s1647_s19 }
  0xb6   : > { %p1256_p1 = pneg %p1255_p9  ;;  %p1260_p3 = por %p1259_p6, %p1258_p4 }
  0xb8   : > { %p1262_p13 = por %p1261_p10, %p1260_p3 }
  0xba   : > { %p1263_p2 = pnand %p1262_p13, %p1256_p1 }
  0xbc   : > { %1266 = shalt.err (!%p1263_p2)
}
  0xbd   : > { %s1267_s23 = scalar_lea.vmem %s1655_s22, 128  ;;  %s1386_s21 = smov [#allocation4]  }
  0xbe   : > { %p1268_p8 = scmp.ne.s32.totalorder %s1655_s22, %s1267_s23  ;;  %s1272_s12 = sshll.u32 %s1386_s21, 4  ;;  %s1273_s12 = int_to_ptr.vmem [resolvable:$false] %s1272_s12 }
  0xbf   : > { %s1274_s15 = scalar_lea.vmem %s1273_s12, 256  ;;  %p1275_p12 = scmp.lt.s32.totalorder %s1655_s22, %s1273_s12 }
  0xc0   : > { %p1270_p9 = pnand %p1268_p8, %p1254_p7  ;;  %p1276_p4 = scmp.lt.s32.totalorder %s1274_s15, %s1267_s23 }
  0xc2   : > { %p1271_p0 = pneg %p1270_p9  ;;  %p1277_p6 = por %p1276_p4, %p1275_p12 }
  0xc4   : > { %p1278_p3 = pnand %p1277_p6, %p1271_p0 }
  0xc6   : > { %1281 = shalt.err (!%p1278_p3)
}
  0xc7   : > { %989 = dma.hbm_to_vmem [thread:$0]  (!%p1651_p5), %s1647_s19, 128, %s1655_s22, %s327_s17  }
  0xc8   : > { %p1808_p1 = scmp.ne.s32.totalorder %s1796_s9, 0 }
  0xc9   : > { %s1685_s1 = sand.u32 (!%p1808_p1), 1, %s1360_s25  }
  0xca   : > { %346 = sbr.rel (%p1808_p1) target bundleno = 987 (0x3db), region = 48  ;;  %s849_s16 = sshll.u32 (!%p1808_p1), %s1685_s1, 3 }
  0xcb   : > { %s349_s10 = scalar_lea.sflag (!%p1808_p1), [#allocation5], %s1685_s1  ;;  %s352_s11 = scalar_lea.vmem (!%p1808_p1), [#allocation4], %s849_s16 }
  0xd1   : > { %1335 = dma.done.wait (%p1626_p11), %s349_s10, 128  }
  0xd2   : > { %1337 = vsyncadd (%p1626_p11), %s349_s10, 4294967168  ;;  %p1809_p12 = scmp.ne.s32.totalorder %s1795_s8, 0 }
  0xd4   : > { %1339 = dma.done.wait (%p1809_p12), [#allocation8], 32  }
  0xd5   : > { %1341 = vsyncadd (%p1809_p12), [#allocation8], 4294967264 }
  0xd6   : > { %1343 = dma.done.wait (%p1809_p12), [#allocation11], 1040  }
  0xd7   : > { %1345 = vsyncadd (%p1809_p12), [#allocation11], 4294966256 }
  0xd8   : > { %1347 = dma.done.wait (%p1809_p12), [#allocation14], 1040  }
  0xd9   : > { %1349 = vsyncadd (%p1809_p12), [#allocation14], 4294966256  ;;  %v413_v0 = vld [vmem:[%s352_s11] sm:$0xff]  ;;  %v1066_v5 = vld [vmem:[#allocation10] sm:$0xff]   ;;  %v1387_v6 = vmov 0.0   ;;  %vm1388_vm0 = vmmov 0  }
  0xda   : > { %414 = vadd.xlane.f32.xlu0 %v413_v0  ;;  %899 = vmatprep.subr.bf16.mxu0 %v1387_v6  ;;  %v1067_v7 = vld [vmem:[#allocation10 + $0x8] sm:$0xff]   ;;  %v1068_v8 = vld [vmem:[#allocation10 + $0x10] sm:$0xff]   ;;  %v1069_v9 = vld [vmem:[#allocation10 + $0x18] sm:$0xff]   ;;  %s878_s8 = sshll.u32 %s1368_s27, 7  ;;  %s406_s9 = scalar_lea.vmem [#allocation16], %s849_s16 }
  0xdb   : > { %919 = vmatprep.subr.bf16.mxu1 %v1387_v6  ;;  %900 = vmatpush3.bf16.msra.mxu0 %v1066_v5  ;;  %v1070_v10 = vld [vmem:[#allocation10 + $0x20] sm:$0xff]   ;;  %v1071_v11 = vld [vmem:[#allocation10 + $0x28] sm:$0xff]   ;;  %v1072_v12 = vld [vmem:[#allocation10 + $0x30] sm:$0xff]   ;;  %s695_s18 = sshll.u32 %s406_s9, 4  ;;  %s1731_s14 = scalar_lea.hbm %s1787_s7, %s878_s8  ;;  %s1733_s18 = int_to_ptr.vmem [resolvable:$true] %s695_s18 }
  0xdc   : > { %901 = vmatprep.subr.bf16.mxu0 %v1387_v6  ;;  %v1073_v13 = vld [vmem:[#allocation10 + $0x38] sm:$0xff]   ;;  %915 = vmatprep.mubr.msk.bf16.mxu0 %vm1388_vm0, %v1387_v6  ;;  %v1074_v14 = vld [vmem:[#allocation13] sm:$0xff]   ;;  %v1075_v15 = vld [vmem:[#allocation13 + $0x8] sm:$0xff]   ;;  %s682_s27 = scalar_lea.sflag [#allocation6], %s1685_s1  ;;  %s1282_s17 = scalar_lea.vmem %s1733_s18, 128 }
  0xdd   : > { %935 = vmatprep.mubr.msk.bf16.mxu1 %vm1388_vm0, %v1387_v6  ;;  %920 = vmatpush3.bf16.msra.mxu1 %v1074_v14  ;;  %v1076_v16 = vld [vmem:[#allocation13 + $0x10] sm:$0xff]   ;;  %v1077_v17 = vld [vmem:[#allocation13 + $0x18] sm:$0xff]   ;;  %v1078_v18 = vld [vmem:[#allocation13 + $0x20] sm:$0xff]   ;;  %p1283_p11 = scmp.ne.s32.totalorder %s1733_s18, %s1282_s17  ;;  %p1810_p0 = scmp.ne.s32.totalorder %s1805_s3, 0 }
  0xde   : > { %921 = vmatprep.subr.bf16.mxu1 %v1387_v6  ;;  %v1079_v19 = vld [vmem:[#allocation13 + $0x28] sm:$0xff]   ;;  %v857_v27 = vld [vmem:[#allocation7] ss:$0 sm:$0xff]  ;;  %v858_v29 = vld [vmem:[#allocation9] ss:$0 sm:$0xff]  ;;  %s1389_s23 = smov [#allocation16]  }
  0xdf   : > { %902 = vmatpush3.bf16.msra.mxu0 %v1067_v7  ;;  %v1080_v34 = vld [vmem:[#allocation13 + $0x30] sm:$0xff]   ;;  %v1081_v35 = vld [vmem:[#allocation13 + $0x38] sm:$0xff]   ;;  %v876_v44 = vld [vmem:[#allocation15] ss:$0 sm:$0xff]  ;;  %p1284_p5 = pnand %p1283_p11, %p1810_p0  ;;  %s1286_s21 = sshll.u32 %s1389_s23, 4  ;;  %s1287_s21 = int_to_ptr.vmem [resolvable:$false] %s1286_s21 }
  0xe0   : > { %903 = vmatprep.subr.bf16.mxu0 %v1387_v6  ;;  %v859_v36 = vld [vmem:[#allocation12] ss:$0 sm:$0xff]  ;;  %s1288_s12 = scalar_lea.vmem %s1287_s21, 256  ;;  %p1289_p10 = scmp.lt.s32.totalorder %s1733_s18, %s1287_s21 }
  0xe1   : > { %922 = vmatpush3.bf16.msra.mxu1 %v1075_v15  ;;  %p1285_p7 = pneg %p1284_p5  ;;  %p1290_p13 = scmp.lt.s32.totalorder %s1288_s12, %s1282_s17 }
  0xe2   : > { %923 = vmatprep.subr.bf16.mxu1 %v1387_v6 }
  0xe3   : > { %904 = vmatpush3.bf16.msra.mxu0 %v1068_v8  ;;  %p1291_p2 = por %p1290_p13, %p1289_p10 }
  0xe4   : > { %905 = vmatprep.subr.bf16.mxu0 %v1387_v6 }
  0xe5   : > { %924 = vmatpush3.bf16.msra.mxu1 %v1076_v16  ;;  %p1292_p8 = pnand %p1291_p2, %p1285_p7 }
  0xe6   : > { %925 = vmatprep.subr.bf16.mxu1 %v1387_v6 }
  0xe7   : > { %906 = vmatpush3.bf16.msra.mxu0 %v1069_v9 }
  0xe8   : > { %907 = vmatprep.subr.bf16.mxu0 %v1387_v6 }
  0xe9   : > { %926 = vmatpush3.bf16.msra.mxu1 %v1077_v17 }
  0xea   : > { %927 = vmatprep.subr.bf16.mxu1 %v1387_v6 }
  0xeb   : > { %908 = vmatpush3.bf16.msra.mxu0 %v1070_v10 }
  0xec   : > { %909 = vmatprep.subr.bf16.mxu0 %v1387_v6 }
  0xed   : > { %928 = vmatpush3.bf16.msra.mxu1 %v1078_v18 }
  0xee   : > { %929 = vmatprep.subr.bf16.mxu1 %v1387_v6 }
  0xef   : > { %910 = vmatpush3.bf16.msra.mxu0 %v1071_v11 }
  0xf0   : > { %911 = vmatprep.subr.bf16.mxu0 %v1387_v6 }
  0xf1   : > { %930 = vmatpush3.bf16.msra.mxu1 %v1079_v19 }
  0xf2   : > { %931 = vmatprep.subr.bf16.mxu1 %v1387_v6 }
  0xf3   : > { %912 = vmatpush3.bf16.msra.mxu0 %v1072_v12 }
  0xf4   : > { %913 = vmatprep.subr.bf16.mxu0 %v1387_v6 }
  0xf5   : > { %932 = vmatpush3.bf16.msra.mxu1 %v1080_v34 }
  0xf6   : > { %933 = vmatprep.subr.bf16.mxu1 %v1387_v6 }
  0xf7   : > { %914 = vmatpush3.bf16.msra.mxu0 %v1073_v13 }
  0xf9   : > { %934 = vmatpush3.bf16.msra.mxu1 %v1081_v35 }
 0x167   : > { %v415_v1 = vpop.xlane.xlu0 %414 }
 0x168   : > { %v416_v2 = vmul.f32 0.03125, %v415_v1 }
 0x16a   : > { %v417_v3 = vsub.f32 %v413_v0, %v416_v2  ;;  %v421_v20 = vmul.f32 %v416_v2, %v416_v2 }
 0x16c   : > { %v418_v4 = vmul.f32 %v417_v3, %v417_v3  ;;  %v422_v21 = vmul.f32 96.0, %v421_v20 }
 0x16e   : > { %419 = vadd.xlane.f32.xlu0 %v418_v4 }
 0x1fb   : > { %v420_v22 = vpop.xlane.xlu0 %419 }
 0x1fc   : > { %v423_v23 = vsub.f32 %v420_v22, %v422_v21 }
 0x1fe   : > { %v424_v24 = vmul.f32 0.03125, %v423_v23 }
 0x200   : > { %v425_v25 = vadd.f32 1e-05, %v424_v24 }
 0x202   : > { %1082 = vrsqrt.f32 %v425_v25 }
 0x20c   : > { %v1083_v26 = vpop.eup %1082 }
 0x20d   : > { %v427_v28 = vmul.f32 %v1083_v26, %v417_v3 }
 0x20f   : > { %v435_v30 = vmul.f32 %v857_v27, %v427_v28 }
 0x211   : > { %v443_v31 = vadd.f32 %v858_v29, %v435_v30 }
 0x213   : > { %v444_v32 = vpack.c.bf16 %v443_v31, %v443_v31 }
 0x215   : > { %445 = vst [vmem:[#allocation2] sm:$0xf] %v444_v32 }
 0x21c   : > { %v447_v33 = vld [vmem:[#allocation2] sm:$0xf] }
 0x21d   : > { %916 = vmatmul.mubr.bf16.vlgmr.msra.gmra.mrb[0].mxu0 %v447_v33 }
 0x2f0   : > { %v553_v37 = vpop.f32.mrb[0].mxu0 }
 0x2f1   : > { %v554_v38 = vadd.f32 %v859_v36, %v553_v37  ;;  %v917_v39 = vpop.f32.mrb[1].mxu0 }
 0x2f2   : > { %v556_v40 = vpop.f32.mrb[2].mxu0 }
 0x2f3   : > { %v559_v41 = vmax.f32 %v554_v38, 0.0  ;;  %v918_v42 = vpop.f32.mrb[3].mxu0 }
 0x2f5   : > { %v561_v43 = vpack.c.bf16 %v559_v41, %v559_v41 }
 0x2f7   : > { %936 = vmatmul.mubr.bf16.vlgmr.msra.gmra.mrb[0].mxu1 %v561_v43 }
 0x3ca   : > { %v660_v45 = vpop.f32.mrb[0].mxu1 }
 0x3cb   : > { %v679_v46 = vadd.f32 %v876_v44, %v660_v45  ;;  %v937_v47 = vpop.f32.mrb[1].mxu1 }
 0x3cc   : > { %v663_v48 = vpop.f32.mrb[2].mxu1 }
 0x3cd   : > { %680 = vst [vmem:[%s406_s9] sm:$0xff] %v679_v46  ;;  %v938_v49 = vpop.f32.mrb[3].mxu1 }
 0x3ce   : > { %1295 = shalt.err (!%p1292_p8)
}
 0x3cf   : > { %s1296_s15 = scalar_lea.hbm %s1731_s14, 128  ;;  %s1300_s10 = scalar_lea.hbm %s1787_s7, 256 }
 0x3d0   : > { %p1297_p9 = scmp.ne.s32.totalorder %s1731_s14, %s1296_s15  ;;  %p1301_p3 = scmp.lt.u32.totalorder %s1731_s14, %s1787_s7 }
 0x3d1   : > { %p1302_p1 = scmp.lt.u32.totalorder %s1300_s10, %s1296_s15  ;;  %p1304_p11 = scmp.lt.u32.totalorder %s1296_s15, %s1731_s14 }
 0x3d2   : > { %p1298_p4 = pnand %p1297_p9, %p1810_p0 }
 0x3d3   : > { %p1303_p12 = por %p1302_p1, %p1301_p3 }
 0x3d4   : > { %p1299_p6 = pneg %p1298_p4 }
 0x3d5   : > { %p1305_p5 = por %p1304_p11, %p1303_p12 }
 0x3d7   : > { %p1306_p7 = pnand %p1305_p5, %p1299_p6 }
 0x3d9   : > { %1309 = shalt.err (!%p1306_p7)
}
 0x3da   : > { %965 = dma.vmem_to_hbm [thread:$0]  (%p1810_p0), %s1733_s18, 128, %s1731_s14, %s682_s27  }
 0x3db PF: > { %s707_s9 = sand.u32 1, %s1356_s24   ;;  %p1811_p10 = scmp.ne.s32.totalorder %s1806_s30, 0 }
 0x3dc   : > { %p1812_p13 = scmp.ge.s32.totalorder %s1376_s29, 2  ;;  %s708_s19 = scalar_lea.sflag [#allocation6], %s707_s9 }
 0x3de   : > { %p991_p2 = pnand %p1812_p13, %p1811_p10 }
 0x3e0   : > { %1351 = dma.done.wait (!%p991_p2), %s708_s19, 128  }
 0x3e1   : > { %1353 = vsyncadd (!%p991_p2), %s708_s19, 4294967168  ;;  %s26_s29 = sadd.s32 1, %s1376_s29   ;;  %s1813_s24 = smov %s1360_s25 }
 0x3e2   : > { %p23_p8 = scmp.ge.s32.totalorder %s26_s29, 4   ;;  %s1814_s25 = smov %s1364_s26 }
 0x3e3   : > { %s1815_s26 = smov %s1635_s20  ;;  %s1816_s27 = smov %s1372_s28 }
 0x3e4   : > { %s1817_s28 = smov %s1819_s13  ;;  %25 = sbr.rel (!%p23_p8) target bundleno = 12 (0xc), region = 128 }
 0x3eb   :  { %713 = vsyncpa [#allocation5], 1 }
 0x3ec   :  { %715 = vsyncpa [#allocation5 + $0x1], 1 }
 0x3ed   :  { %716 = vsyncpa [#allocation8], 1 }
 0x3ee   :  { %717 = vsyncpa [#allocation11], 1 }
 0x3ef   :  { %718 = vsyncpa [#allocation14], 1 }
 0x3f0   :  { %719 = vsyncpa [#allocation6], 1 }
 0x3f1   :  { %721 = vsyncpa [#allocation6 + $0x1], 1 }

</bundles_post_ra>
